<compile_context>
chip_gen: v7x
topology: tpu7x:2x2x1
jax: 0.10.0
libtpu: 0.0.40
codegen_flags: <defaults>
</compile_context>

<pallas_src>
import functools

import jax
import jax.numpy as jnp
from jax.experimental import pallas as pl
from jax.experimental.pallas import tpu as pltpu


def _flow_kernel(a_ref, b_ref, c_ref, x_ref, xo_ref, ld_ref, *, length, dim):
    x = x_ref[...].astype(jnp.float32)                     # (TB, D)
    tb = x.shape[0]
    log_det = jnp.zeros((tb, 1), jnp.float32)              # (TB, 1)

    def step(xc, p1, p2, a, b, ci):
        diff = xc - ci                                      # (TB, D)
        # XLU lane-reduce (kept over the MXU matvec: default-precision f32 dot
        # would truncate to bf16 before sqrt/log, and MXU shares the vex slot
        # with the XLU anyway).
        r2 = jnp.sum(diff * diff, axis=1, keepdims=True)    # (TB, 1)
        r = jnp.sqrt(r2)
        d = a + r
        # EUP reciprocal + one Newton refinement (~f32 accuracy, frees VPU).
        h = pl.reciprocal(d, approx=True)
        h = h * (2.0 - d * h)
        tmp = b * h                                         # (TB, 1)
        xc = xc + tmp * diff                                # (TB, D)
        # Fused-log carries:  1 + tmp - b*h^2*r == 1 + a*b*h^2 (exact identity)
        p1 = p1 * (1.0 + tmp)
        p2 = p2 * (1.0 + (a * b) * (h * h))
        return xc, p1, p2

    # Chain in chunks of <= 8 steps; Jacobian factors accumulate as products,
    # one pair of EUP logs per chunk (also bounds under/overflow for long L).
    CHUNK = 8
    for start in range(0, length, CHUNK):
        p1 = jnp.ones((tb, 1), jnp.float32)
        p2 = jnp.ones((tb, 1), jnp.float32)
        for i in range(start, min(start + CHUNK, length)):
            x, p1, p2 = step(x, p1, p2, a_ref[i], b_ref[i], c_ref[i:i + 1, :])
        log_det = log_det + (dim - 1) * jnp.log(p1) + jnp.log(p2)

    xo_ref[...] = x.astype(xo_ref.dtype)
    ld_ref[...] = log_det.astype(ld_ref.dtype)


def _round_up(x, m):
    return ((x + m - 1) // m) * m


def _vmem_capacity_bytes():
    """Physical VMEM of the attached TPU; conservative (v7x-safe) fallback."""
    try:
        cap = getattr(pltpu.get_tpu_info(), "vmem_capacity_bytes", None)
        if cap:
            return int(cap)
    except Exception:
        pass
    return 64 << 20


def flow_forward(x, a_raw, b_raw, c, *, block_b=None):
    """Chain of radial flows.  x: (B, D); a_raw/b_raw: (L, 1); c: (L, D).

    Returns (x_out (B, D) in x.dtype, log_det (B, 1) float32).
    Note: x_out aliases x's HBM buffer; wrap the call in jax.jit with
    donate_argnums for x to realize the in-place write (otherwise XLA keeps a
    defensive copy, which is still correct).
    """
    x = jnp.asarray(x)
    if not jnp.issubdtype(x.dtype, jnp.floating):
        x = x.astype(jnp.float32)
    B, D = x.shape
    L = int(c.shape[0])

    # Per-flow scalars computed once (not per tile), flattened to 1-D for SMEM.
    a_vec = jnp.exp(jnp.asarray(a_raw, jnp.float32)).reshape(L)            # a = exp(a_raw)
    b_vec = jax.nn.softplus(jnp.asarray(b_raw, jnp.float32)).reshape(L) - a_vec  # b = softplus(b_raw) - a
    c = jnp.asarray(c, jnp.float32)

    itemsize = x.dtype.itemsize
    big_vmem = _vmem_capacity_bytes() >= (96 << 20)   # v5e/v6e: 128 MiB; v7x: 64 MiB

    if block_b is None:
        # Size by bytes: 4 live block buffers (x in + x_out, each double-
        # buffered) must fit VMEM.
        #   v5e/v6e : 8 MiB blocks -> ~32 MiB, covered by vmem_limit_bytes=64 MiB
        #   v7x/unk : 4 MiB blocks -> ~16 MiB, under the 32 MiB scoped default
        target_block_bytes = (8 << 20) if big_vmem else (4 << 20)
        tb = max(128, (target_block_bytes // max(1, itemsize * D) // 128) * 128)
        if B >= 256:
            # Keep >= 2 grid steps so the "parallel" batch axis can shard over
            # v7x's two TensorCores (negligible cost on single-TC chips).
            tb = min(tb, _round_up(pl.cdiv(B, 2), 128))
        block_b = B if B <= tb else tb   # == B (full dim) or a multiple of 128

    grid = (pl.cdiv(B, block_b),)        # ragged last block handled by Pallas

    compiler_kwargs = dict(dimension_semantics=("parallel",))
    if big_vmem:
        compiler_kwargs["vmem_limit_bytes"] = 64 << 20

    kernel = functools.partial(_flow_kernel, length=L, dim=D)
    smem = pl.BlockSpec(memory_space=pltpu.MemorySpace.SMEM)

    x_out, log_det = pl.pallas_call(
        kernel,
        grid=grid,
        in_specs=[
            smem,                                           # a  (L,)  scalars
            smem,                                           # b  (L,)  scalars
            pl.BlockSpec((L, D), lambda i: (0, 0)),         # c  resident in VMEM
            pl.BlockSpec((block_b, D), lambda i: (i, 0)),   # x  batch tile
        ],
        out_specs=(
            pl.BlockSpec((block_b, D), lambda i: (i, 0)),   # x_out tile
            pl.BlockSpec((block_b, 1), lambda i: (i, 0)),   # log_det tile
        ),
        out_shape=(jax.ShapeDtypeStruct((B, D), x.dtype),
                   jax.ShapeDtypeStruct((B, 1), jnp.float32)),
        input_output_aliases={3: 0},                        # x_out reuses x's HBM buffer
        compiler_params=pltpu.CompilerParams(**compiler_kwargs),
    )(a_vec, b_vec, c, x)

    return x_out, log_det


def flow_forward_ref(x, a_raw, b_raw, c):
    """Plain-JAX reference (mirrors the PyTorch module exactly)."""
    L, D = c.shape
    x = jnp.asarray(x, jnp.float32)
    log_det = jnp.zeros((x.shape[0], 1), jnp.float32)
    for i in range(L):
        a = jnp.exp(a_raw[i:i + 1, :])
        b = -a + jax.nn.softplus(b_raw[i:i + 1, :])
        ci = c[i:i + 1, :]
        r = jnp.linalg.norm(x - ci, axis=1, keepdims=True)
        h = 1.0 / (a + r)
        tmp = b * h
        x = x + tmp * (x - ci)
        log_det = log_det + (D - 1) * jnp.log(1.0 + tmp) \
                          + jnp.log(1.0 + tmp - b * h * h * r)
    return x, log_det


if __name__ == "__main__":
    B, D, LENGTH = 4, 32, 3

    key = jax.random.PRNGKey(0)
    kx, ka, kb, kc = jax.random.split(key, 4)

    # Deterministic "torch.randn"-style parameter init.
    x = jax.random.normal(kx, (B, D), dtype=jnp.float32)
    a_raw = jax.random.normal(ka, (LENGTH, 1), dtype=jnp.float32)   # RadialFlow.a per step
    b_raw = jax.random.normal(kb, (LENGTH, 1), dtype=jnp.float32)   # RadialFlow.b per step
    c = jax.random.normal(kc, (LENGTH, D), dtype=jnp.float32)       # RadialFlow.c per step

    x_out, log_det = jax.block_until_ready(flow_forward(x, a_raw, b_raw, c))

    x_ref, ld_ref = flow_forward_ref(x, a_raw, b_raw, c)
    assert x_out.shape == (B, D) and log_det.shape == (B, 1)
    assert jnp.allclose(x_out, x_ref, atol=1e-4, rtol=1e-4)
    assert jnp.allclose(log_det, ld_ref, atol=1e-4, rtol=1e-4)

    print("KERNEL_OK")
</pallas_src>

<mosaic_0001>
module attributes {stable_mosaic.version = 11 : i64} {
  func.func @_flow_kernel(%arg0: i32, %arg1: memref<3xf32, #tpu.memory_space<smem>>, %arg2: memref<3xf32, #tpu.memory_space<smem>>, %arg3: memref<3x32xf32, #tpu.memory_space<vmem>>, %arg4: memref<4x32xf32, #tpu.memory_space<vmem>>, %arg5: memref<4x32xf32, #tpu.memory_space<vmem>>, %arg6: memref<4x1xf32, #tpu.memory_space<vmem>>) attributes {dimension_semantics = [#tpu.dimension_semantics<parallel>], iteration_bounds = array<i64: 1>, scalar_prefetch = 0 : i64, scratch_operands = 0 : i64, tpu.core_type = #tpu.core_type<tc>, window_params = [{transform_indices = @transform_0, window_bounds = array<i64: 3>}, {transform_indices = @transform_1, window_bounds = array<i64: 3>}, {pipeline_mode = #tpu.pipeline_mode<synchronous>, transform_indices = @transform_2, window_bounds = array<i64: 3, 32>}, {transform_indices = @transform_3, window_bounds = array<i64: 4, 32>}, {transform_indices = @transform_4, window_bounds = array<i64: 4, 32>}, {transform_indices = @transform_5, window_bounds = array<i64: 4, 1>}]} {
    %c0 = arith.constant 0 : index
    %c0_0 = arith.constant 0 : index
    %0 = vector.load %arg4[%c0, %c0_0] : memref<4x32xf32, #tpu.memory_space<vmem>>, vector<4x32xf32>
    %cst = arith.constant 0.000000e+00 : f32
    %1 = vector.broadcast %cst : f32 to vector<4x1xf32>
    %cst_1 = arith.constant 1.000000e+00 : f32
    %2 = vector.broadcast %cst_1 : f32 to vector<4x1xf32>
    %cst_2 = arith.constant 1.000000e+00 : f32
    %3 = vector.broadcast %cst_2 : f32 to vector<4x1xf32>
    %c0_3 = arith.constant 0 : index
    %4 = memref.load %arg1[%c0_3] : memref<3xf32, #tpu.memory_space<smem>>
    %c0_4 = arith.constant 0 : index
    %5 = memref.load %arg2[%c0_4] : memref<3xf32, #tpu.memory_space<smem>>
    %c0_5 = arith.constant 0 : index
    %c0_6 = arith.constant 0 : index
    %6 = vector.load %arg3[%c0_5, %c0_6] : memref<3x32xf32, #tpu.memory_space<vmem>>, vector<1x32xf32>
    %7 = vector.broadcast %6 : vector<1x32xf32> to vector<4x32xf32>
    %8 = arith.subf %0, %7 : vector<4x32xf32>
    %9 = arith.mulf %8, %8 : vector<4x32xf32>
    %cst_7 = arith.constant dense<0.000000e+00> : vector<4xf32>
    %10 = vector.multi_reduction <add>, %9, %cst_7 [1] : vector<4x32xf32> to vector<4xf32>
    %11 = vector.shape_cast %10 : vector<4xf32> to vector<4x1xf32>
    %12 = math.sqrt %11 : vector<4x1xf32>
    %13 = vector.broadcast %4 : f32 to vector<4x1xf32>
    %14 = arith.addf %13, %12 : vector<4x1xf32>
    %15 = tpu.reciprocal %14 {approx = true} : vector<4x1xf32> -> vector<4x1xf32>
    %16 = arith.mulf %14, %15 : vector<4x1xf32>
    %cst_8 = arith.constant 2.000000e+00 : f32
    %17 = vector.broadcast %cst_8 : f32 to vector<4x1xf32>
    %18 = arith.subf %17, %16 : vector<4x1xf32>
    %19 = arith.mulf %15, %18 : vector<4x1xf32>
    %20 = vector.broadcast %5 : f32 to vector<4x1xf32>
    %21 = arith.mulf %20, %19 : vector<4x1xf32>
    %22 = vector.broadcast %21 : vector<4x1xf32> to vector<4x32xf32>
    %23 = arith.mulf %22, %8 : vector<4x32xf32>
    %24 = arith.addf %0, %23 : vector<4x32xf32>
    %cst_9 = arith.constant 1.000000e+00 : f32
    %25 = vector.broadcast %cst_9 : f32 to vector<4x1xf32>
    %26 = arith.addf %25, %21 : vector<4x1xf32>
    %27 = arith.mulf %2, %26 : vector<4x1xf32>
    %28 = arith.mulf %4, %5 : f32
    %29 = arith.mulf %19, %19 : vector<4x1xf32>
    %30 = vector.broadcast %28 : f32 to vector<4x1xf32>
    %31 = arith.mulf %30, %29 : vector<4x1xf32>
    %cst_10 = arith.constant 1.000000e+00 : f32
    %32 = vector.broadcast %cst_10 : f32 to vector<4x1xf32>
    %33 = arith.addf %32, %31 : vector<4x1xf32>
    %34 = arith.mulf %3, %33 : vector<4x1xf32>
    %c1 = arith.constant 1 : index
    %35 = memref.load %arg1[%c1] : memref<3xf32, #tpu.memory_space<smem>>
    %c1_11 = arith.constant 1 : index
    %36 = memref.load %arg2[%c1_11] : memref<3xf32, #tpu.memory_space<smem>>
    %c1_12 = arith.constant 1 : index
    %c0_13 = arith.constant 0 : index
    %37 = vector.load %arg3[%c1_12, %c0_13] : memref<3x32xf32, #tpu.memory_space<vmem>>, vector<1x32xf32>
    %38 = vector.broadcast %37 : vector<1x32xf32> to vector<4x32xf32>
    %39 = arith.subf %24, %38 : vector<4x32xf32>
    %40 = arith.mulf %39, %39 : vector<4x32xf32>
    %cst_14 = arith.constant dense<0.000000e+00> : vector<4xf32>
    %41 = vector.multi_reduction <add>, %40, %cst_14 [1] : vector<4x32xf32> to vector<4xf32>
    %42 = vector.shape_cast %41 : vector<4xf32> to vector<4x1xf32>
    %43 = math.sqrt %42 : vector<4x1xf32>
    %44 = vector.broadcast %35 : f32 to vector<4x1xf32>
    %45 = arith.addf %44, %43 : vector<4x1xf32>
    %46 = tpu.reciprocal %45 {approx = true} : vector<4x1xf32> -> vector<4x1xf32>
    %47 = arith.mulf %45, %46 : vector<4x1xf32>
    %cst_15 = arith.constant 2.000000e+00 : f32
    %48 = vector.broadcast %cst_15 : f32 to vector<4x1xf32>
    %49 = arith.subf %48, %47 : vector<4x1xf32>
    %50 = arith.mulf %46, %49 : vector<4x1xf32>
    %51 = vector.broadcast %36 : f32 to vector<4x1xf32>
    %52 = arith.mulf %51, %50 : vector<4x1xf32>
    %53 = vector.broadcast %52 : vector<4x1xf32> to vector<4x32xf32>
    %54 = arith.mulf %53, %39 : vector<4x32xf32>
    %55 = arith.addf %24, %54 : vector<4x32xf32>
    %cst_16 = arith.constant 1.000000e+00 : f32
    %56 = vector.broadcast %cst_16 : f32 to vector<4x1xf32>
    %57 = arith.addf %56, %52 : vector<4x1xf32>
    %58 = arith.mulf %27, %57 : vector<4x1xf32>
    %59 = arith.mulf %35, %36 : f32
    %60 = arith.mulf %50, %50 : vector<4x1xf32>
    %61 = vector.broadcast %59 : f32 to vector<4x1xf32>
    %62 = arith.mulf %61, %60 : vector<4x1xf32>
    %cst_17 = arith.constant 1.000000e+00 : f32
    %63 = vector.broadcast %cst_17 : f32 to vector<4x1xf32>
    %64 = arith.addf %63, %62 : vector<4x1xf32>
    %65 = arith.mulf %34, %64 : vector<4x1xf32>
    %c2 = arith.constant 2 : index
    %66 = memref.load %arg1[%c2] : memref<3xf32, #tpu.memory_space<smem>>
    %c2_18 = arith.constant 2 : index
    %67 = memref.load %arg2[%c2_18] : memref<3xf32, #tpu.memory_space<smem>>
    %c2_19 = arith.constant 2 : index
    %c0_20 = arith.constant 0 : index
    %68 = vector.load %arg3[%c2_19, %c0_20] : memref<3x32xf32, #tpu.memory_space<vmem>>, vector<1x32xf32>
    %69 = vector.broadcast %68 : vector<1x32xf32> to vector<4x32xf32>
    %70 = arith.subf %55, %69 : vector<4x32xf32>
    %71 = arith.mulf %70, %70 : vector<4x32xf32>
    %cst_21 = arith.constant dense<0.000000e+00> : vector<4xf32>
    %72 = vector.multi_reduction <add>, %71, %cst_21 [1] : vector<4x32xf32> to vector<4xf32>
    %73 = vector.shape_cast %72 : vector<4xf32> to vector<4x1xf32>
    %74 = math.sqrt %73 : vector<4x1xf32>
    %75 = vector.broadcast %66 : f32 to vector<4x1xf32>
    %76 = arith.addf %75, %74 : vector<4x1xf32>
    %77 = tpu.reciprocal %76 {approx = true} : vector<4x1xf32> -> vector<4x1xf32>
    %78 = arith.mulf %76, %77 : vector<4x1xf32>
    %cst_22 = arith.constant 2.000000e+00 : f32
    %79 = vector.broadcast %cst_22 : f32 to vector<4x1xf32>
    %80 = arith.subf %79, %78 : vector<4x1xf32>
    %81 = arith.mulf %77, %80 : vector<4x1xf32>
    %82 = vector.broadcast %67 : f32 to vector<4x1xf32>
    %83 = arith.mulf %82, %81 : vector<4x1xf32>
    %84 = vector.broadcast %83 : vector<4x1xf32> to vector<4x32xf32>
    %85 = arith.mulf %84, %70 : vector<4x32xf32>
    %86 = arith.addf %55, %85 : vector<4x32xf32>
    %cst_23 = arith.constant 1.000000e+00 : f32
    %87 = vector.broadcast %cst_23 : f32 to vector<4x1xf32>
    %88 = arith.addf %87, %83 : vector<4x1xf32>
    %89 = arith.mulf %58, %88 : vector<4x1xf32>
    %90 = arith.mulf %66, %67 : f32
    %91 = arith.mulf %81, %81 : vector<4x1xf32>
    %92 = vector.broadcast %90 : f32 to vector<4x1xf32>
    %93 = arith.mulf %92, %91 : vector<4x1xf32>
    %cst_24 = arith.constant 1.000000e+00 : f32
    %94 = vector.broadcast %cst_24 : f32 to vector<4x1xf32>
    %95 = arith.addf %94, %93 : vector<4x1xf32>
    %96 = arith.mulf %65, %95 : vector<4x1xf32>
    %97 = math.log %89 : vector<4x1xf32>
    %cst_25 = arith.constant 3.100000e+01 : f32
    %98 = vector.broadcast %cst_25 : f32 to vector<4x1xf32>
    %99 = arith.mulf %98, %97 : vector<4x1xf32>
    %100 = arith.addf %1, %99 : vector<4x1xf32>
    %101 = math.log %96 : vector<4x1xf32>
    %102 = arith.addf %100, %101 : vector<4x1xf32>
    %c0_26 = arith.constant 0 : index
    %c0_27 = arith.constant 0 : index
    %103 = vector.load %arg5[%c0_26, %c0_27] : memref<4x32xf32, #tpu.memory_space<vmem>>, vector<4x32xf32>
    tpu.vector_store %arg5[%c0_26, %c0_27], %86 {strides = array<i32>} : memref<4x32xf32, #tpu.memory_space<vmem>>, vector<4x32xf32>,
    %c0_28 = arith.constant 0 : index
    %c0_29 = arith.constant 0 : index
    %104 = vector.load %arg6[%c0_28, %c0_29] : memref<4x1xf32, #tpu.memory_space<vmem>>, vector<4x1xf32>
    tpu.vector_store %arg6[%c0_28, %c0_29], %102 {strides = array<i32>} : memref<4x1xf32, #tpu.memory_space<vmem>>, vector<4x1xf32>,
    return
  }
  func.func @transform_0(%arg0: i32) -> i32 {
    %c0_i32 = arith.constant 0 : i32
    %c0_i32_0 = arith.constant 0 : i32
    return %c0_i32 : i32
  }
  func.func @transform_1(%arg0: i32) -> i32 {
    %c0_i32 = arith.constant 0 : i32
    %c0_i32_0 = arith.constant 0 : i32
    return %c0_i32 : i32
  }
  func.func @transform_2(%arg0: i32) -> (i32, i32) {
    %c0_i32 = arith.constant 0 : i32
    %c0_i32_0 = arith.constant 0 : i32
    %c0_i32_1 = arith.constant 0 : i32
    return %c0_i32, %c0_i32_0 : i32, i32
  }
  func.func @transform_3(%arg0: i32) -> (i32, i32) {
    %c0_i32 = arith.constant 0 : i32
    %c0_i32_0 = arith.constant 0 : i32
    return %arg0, %c0_i32 : i32, i32
  }
  func.func @transform_4(%arg0: i32) -> (i32, i32) {
    %c0_i32 = arith.constant 0 : i32
    %c0_i32_0 = arith.constant 0 : i32
    return %arg0, %c0_i32 : i32, i32
  }
  func.func @transform_5(%arg0: i32) -> (i32, i32) {
    %c0_i32 = arith.constant 0 : i32
    %c0_i32_0 = arith.constant 0 : i32
    return %arg0, %c0_i32 : i32, i32
  }
}

</mosaic_0001>

<bundles_post_ra>
// kernel: tpu_custom_call.1
= control target key start
LH: loop header
LB: loop body
LE: loop exit
PB: predicated region body
PF: predicated region fallthrough
CT: control target
= control target key end

     0   :  { %11 = vsyncpa [#allocation3], 0  ;;  %s288_s0 = inlined_call_operand.vmem [shape: f32[3], index: 0, kind: input, shape index: {}]   ;;  %s289_s1 = inlined_call_operand.vmem [shape: f32[3], index: 1, kind: input, shape index: {}]   ;;  %s290_s2 = inlined_call_operand.vmem [shape: f32[3,32], index: 2, kind: input, shape index: {}]   ;;  %s291_s3 = inlined_call_operand.vmem [shape: f32[4,32], index: 3, kind: input, shape index: {}, may-alias: {3,4}]   ;;  %s292_s4 = inlined_call_operand.vmem [shape: f32[4,32], index: 4, kind: output, shape index: {0}, may-alias: {3,4}]   ;;  %s293_s5 = inlined_call_operand.vmem [shape: f32[4,1], index: 5, kind: output, shape index: {1}]  }
   0x1   :  { %s19_s20 = sshll.u32 %s288_s0, 4  ;;  %s20_s20 = int_to_ptr.vmem [resolvable:$true] %s19_s20 }
   0x2   :  { %12 = vsyncpa [#allocation5], 0  ;;  %s29_s23 = sshll.u32 %s289_s1, 4  ;;  %s200_s24 = scalar_lea.vmem %s20_s20, 16  ;;  %s30_s23 = int_to_ptr.vmem [resolvable:$true] %s29_s23 }
   0x3   :  { %p201_p0 = scmp.ne.s32.totalorder %s20_s20, %s200_s24  ;;  %p205_p1 = scmp.lt.s32.totalorder %s20_s20, %s20_s20 }
   0x4   :  { %p206_p2 = scmp.lt.s32.totalorder %s200_s24, %s200_s24 }
   0x6   :  { %p207_p3 = por %p206_p2, %p205_p1 }
   0x8   :  { %p208_p4 = pnand %p207_p3, %p201_p0 }
   0xa   :  { %211 = shalt.err (!%p208_p4)
}
   0xb   :  { %s228_s25 = smov [#allocation2]   ;;  %s212_s26 = scalar_lea.vmem %s30_s23, 16 }
   0xc   :  { %22 = dma.vmem_to_smem %s20_s20, 16, %s228_s25, [#allocation3]  }
   0xd   :  { %p213_p5 = scmp.ne.s32.totalorder %s30_s23, %s212_s26  ;;  %p217_p6 = scmp.lt.s32.totalorder %s30_s23, %s30_s23 }
   0xe   :  { %p218_p7 = scmp.lt.s32.totalorder %s212_s26, %s212_s26 }
  0x10   :  { %p219_p8 = por %p218_p7, %p217_p6 }
  0x12   :  { %p220_p9 = pnand %p219_p8, %p213_p5 }
  0x14   :  { %223 = shalt.err (!%p220_p9)
}
  0x15   :  { %s229_s0 = smov [#allocation4]  }
  0x16   :  { %32 = dma.vmem_to_smem %s30_s23, 16, %s229_s0, [#allocation5]  }
  0x17   :  { %224 = dma.done.wait [#allocation3], 16  }
  0x18   :  { %225 = vsyncadd [#allocation3], 4294967280 }
  0x19   :  { %226 = dma.done.wait [#allocation5], 16  }
  0x1a   :  { %227 = vsyncadd [#allocation5], 4294967280 }
  0x1b   :  { %43 = sfence }
  0x1c   :  { %v44_v0 = vld [vmem:[%s291_s3] sm:$0xf]  ;;  %vm54_vm0 = vcmask 257024   ;;  %s46_s30 = sld [smem:[#allocation4]]  ;;  %s176_s9 = sld [smem:[#allocation2 + $0x1]]  ;;  %vm163_vm7 = vcmask 3072  }
  0x1d   :  { %v175_v1 = vld [vmem:[%s290_s2] ss:$0 sm:$0xff]  ;;  %s45_s6 = sld [smem:[#allocation2]]  ;;  %v178_v23 = vld [vmem:[%s290_s2 + $0x1] ss:$0 sm:$0xff]  ;;  %s177_s10 = sld [smem:[#allocation4 + $0x1]] }
  0x1e   :  { %v52_v2 = vsub.f32 %v44_v0, %v175_v1  ;;  %v181_v48 = vld [vmem:[%s290_s2 + $0x2] ss:$0 sm:$0xff]  ;;  %s179_s14 = sld [smem:[#allocation2 + $0x2]] }
  0x1f   :  { %s180_s2 = sld [smem:[#allocation4 + $0x2]] }
  0x20   :  { %v53_v3 = vmul.f32 %v52_v2, %v52_v2 }
  0x22   :  { %v55_v4 = vsel %vm54_vm0, %v53_v3, 0.0  ;;  %v71_v16 = vstv %s46_s30  ;;  %v100_v31 = vstv %s176_s9 }
  0x23   :  { %56 = vadd.xlane.f32.xlu0 %v55_v4  ;;  %s76_s7 = smul.f32 %s46_s30, %s45_s6  ;;  %v65_v8 = vstv %s45_s6  ;;  %v106_v39 = vstv %s177_s10 }
  0x24   :  { %s112_s11 = smul.f32 %s177_s10, %s176_s9  ;;  %v137_v60 = vstv %s179_s14 }
  0x25   :  { %v78_v18 = vstv %s76_s7  ;;  %s149_s15 = smul.f32 %s180_s2, %s179_s14  ;;  %v143_v4 = vstv %s180_s2 }
  0x26   :  { %v114_v41 = vstv %s112_s11 }
  0xb0   :  { %v57_v5 = vpop.xlane.xlu0 %56 }
  0xb1   :  { %184 = vrsqrt.f32 %v57_v5  ;;  %vm60_vm1 = vcmp.eq.f32.partialorder %v57_v5, inf  ;;  %v63_v9 = vand.u32 2147483648, %v57_v5  ;;  %vm62_vm2 = vcmp.eq.f32.partialorder %v57_v5, 0.0 }
  0xbb   :  { %v185_v6 = vpop.eup %184 }
  0xbc   :  { %v59_v7 = vmul.f32 %v185_v6, %v57_v5  ;;  %v151_v6 = vstv %s149_s15 }
  0xbe   :  { %v61_v10 = vsel %vm60_vm1, %v57_v5, %v59_v7 }
  0xbf   :  { %v64_v11 = vsel %vm62_vm2, %v63_v9, %v61_v10 }
  0xc0   :  { %v66_v12 = vadd.f32 %v65_v8, %v64_v11 }
  0xc2   :  { %186 = vrcp.f32 %v66_v12 }
  0xcc   :  { %v187_v13 = vpop.eup %186 }
  0xcd   :  { %v68_v14 = vmul.f32 %v187_v13, %v66_v12 }
  0xcf   :  { %v69_v15 = vsub.f32 2.0, %v68_v14 }
  0xd1   :  { %v70_v17 = vmul.f32 %v187_v13, %v69_v15 }
  0xd3   :  { %v72_v19 = vmul.f32 %v71_v16, %v70_v17  ;;  %v77_v20 = vmul.f32 %v70_v17, %v70_v17 }
  0xd5   :  { %v73_v21 = vmul.f32 %v72_v19, %v52_v2  ;;  %v79_v22 = vmul.f32 %v78_v18, %v77_v20  ;;  %v75_v44 = vadd.f32 1.0, %v72_v19 }
  0xd7   :  { %v74_v24 = vadd.f32 %v73_v21, %v44_v0  ;;  %v80_v49 = vadd.f32 1.0, %v79_v22 }
  0xd9   :  { %v88_v25 = vsub.f32 %v74_v24, %v178_v23 }
  0xdb   :  { %v89_v26 = vmul.f32 %v88_v25, %v88_v25 }
  0xdd   :  { %v90_v27 = vsel %vm54_vm0, %v89_v26, 0.0 }
  0xde   :  { %91 = vadd.xlane.f32.xlu0 %v90_v27 }
 0x16b   :  { %v92_v28 = vpop.xlane.xlu0 %91 }
 0x16c   :  { %188 = vrsqrt.f32 %v92_v28  ;;  %vm95_vm3 = vcmp.eq.f32.partialorder %v92_v28, inf  ;;  %v98_v32 = vand.u32 2147483648, %v92_v28  ;;  %vm97_vm4 = vcmp.eq.f32.partialorder %v92_v28, 0.0 }
 0x176   :  { %v189_v29 = vpop.eup %188 }
 0x177   :  { %v94_v30 = vmul.f32 %v189_v29, %v92_v28 }
 0x179   :  { %v96_v33 = vsel %vm95_vm3, %v92_v28, %v94_v30 }
 0x17a   :  { %v99_v34 = vsel %vm97_vm4, %v98_v32, %v96_v33 }
 0x17b   :  { %v101_v35 = vadd.f32 %v100_v31, %v99_v34 }
 0x17d   :  { %190 = vrcp.f32 %v101_v35 }
 0x187   :  { %v191_v36 = vpop.eup %190 }
 0x188   :  { %v103_v37 = vmul.f32 %v191_v36, %v101_v35 }
 0x18a   :  { %v104_v38 = vsub.f32 2.0, %v103_v37 }
 0x18c   :  { %v105_v40 = vmul.f32 %v191_v36, %v104_v38 }
 0x18e   :  { %v107_v42 = vmul.f32 %v106_v39, %v105_v40  ;;  %v113_v43 = vmul.f32 %v105_v40, %v105_v40 }
 0x190   :  { %v108_v45 = vmul.f32 %v107_v42, %v88_v25  ;;  %v110_v46 = vadd.f32 1.0, %v107_v42  ;;  %v115_v47 = vmul.f32 %v114_v41, %v113_v43 }
 0x192   :  { %v109_v50 = vadd.f32 %v108_v45, %v74_v24  ;;  %v111_v51 = vmul.f32 %v110_v46, %v75_v44  ;;  %v116_v52 = vadd.f32 1.0, %v115_v47 }
 0x194   :  { %v117_v53 = vmul.f32 %v116_v52, %v80_v49  ;;  %v125_v54 = vsub.f32 %v109_v50, %v181_v48 }
 0x196   :  { %v126_v55 = vmul.f32 %v125_v54, %v125_v54 }
 0x198   :  { %v127_v56 = vsel %vm54_vm0, %v126_v55, 0.0 }
 0x199   :  { %128 = vadd.xlane.f32.xlu1 %v127_v56 }
 0x226   :  { %v129_v57 = vpop.xlane.xlu1 %128 }
 0x227   :  { %192 = vrsqrt.f32 %v129_v57  ;;  %vm132_vm5 = vcmp.eq.f32.partialorder %v129_v57, inf  ;;  %v135_v61 = vand.u32 2147483648, %v129_v57  ;;  %vm134_vm6 = vcmp.eq.f32.partialorder %v129_v57, 0.0 }
 0x231   :  { %v193_v58 = vpop.eup %192 }
 0x232   :  { %v131_v59 = vmul.f32 %v193_v58, %v129_v57 }
 0x234   :  { %v133_v62 = vsel %vm132_vm5, %v129_v57, %v131_v59 }
 0x235   :  { %v136_v63 = vsel %vm134_vm6, %v135_v61, %v133_v62 }
 0x236   :  { %v138_v0 = vadd.f32 %v137_v60, %v136_v63 }
 0x238   :  { %194 = vrcp.f32 %v138_v0 }
 0x242   :  { %v195_v1 = vpop.eup %194 }
 0x243   :  { %v140_v2 = vmul.f32 %v195_v1, %v138_v0 }
 0x245   :  { %v141_v3 = vsub.f32 2.0, %v140_v2 }
 0x247   :  { %v142_v5 = vmul.f32 %v195_v1, %v141_v3 }
 0x249   :  { %v144_v7 = vmul.f32 %v143_v4, %v142_v5  ;;  %v150_v8 = vmul.f32 %v142_v5, %v142_v5 }
 0x24b   :  { %v145_v9 = vmul.f32 %v144_v7, %v125_v54  ;;  %v147_v10 = vadd.f32 1.0, %v144_v7  ;;  %v152_v11 = vmul.f32 %v151_v6, %v150_v8 }
 0x24d   :  { %v146_v12 = vadd.f32 %v145_v9, %v109_v50  ;;  %v148_v13 = vmul.f32 %v147_v10, %v111_v51  ;;  %v153_v14 = vadd.f32 1.0, %v152_v11 }
 0x24f   :  { %v154_v15 = vmul.f32 %v153_v14, %v117_v53  ;;  %196 = vlog2.f32 %v148_v13  ;;  %162 = vst.msk [vmem:[%s292_s4] sm:$0xf] %vm54_vm0, %v146_v12 }
 0x251   :  { %198 = vlog2.f32 %v154_v15 }
 0x259   :  { %v197_v16 = vpop.eup %196 }
 0x25a   :  { %v156_v17 = vmul.f32 0.6931472, %v197_v16 }
 0x25b   :  { %v199_v18 = vpop.eup %198 }
 0x25c   :  { %v157_v19 = vmul.f32 31.0, %v156_v17  ;;  %v160_v20 = vmul.f32 0.6931472, %v199_v18 }
 0x25e   :  { %v161_v21 = vadd.f32 %v160_v20, %v157_v19 }
 0x260   :  { %164 = vst.msk [vmem:[%s293_s5] sm:$0xf] %vm163_vm7, %v161_v21 }
 0x261   :  { %173 = vsyncpa [#allocation3], 1 }
 0x262   :  { %174 = vsyncpa [#allocation5], 1 }

</bundles_post_ra>
